<compile_context>
chip_gen: v7x
topology: tpu7x:2x2x1
jax: 0.10.0
libtpu: 0.0.40
codegen_flags: <defaults>
</compile_context>

<pallas_src>
import functools

import jax
import jax.numpy as jnp
from jax.experimental import pallas as pl
from jax.experimental.pallas import tpu as pltpu


def _conv_gemm_kernel(p_ref, w_ref, b_ref, o_ref):
    """Fused im2col GEMM + bias for one batch element (one grid step).

    p_ref : (K, P)     K = KH*KW*Cin, P = Ho*Wo   bf16 patches (lane-dense)
    w_ref : (Cout, K)  bf16 weights, K ordered (kh, kw, ci)
    b_ref : (Cout, 1)  f32 bias column (broadcast over lanes)
    o_ref : (Cout, P)  lane-dense, NCHW-flat output slab
    """
    acc = jnp.dot(w_ref[...], p_ref[...], preferred_element_type=jnp.float32)
    o_ref[...] = (acc + b_ref[...]).astype(o_ref.dtype)


@functools.partial(jax.jit, static_argnames=("stride", "dilation"))
def dilated_conv2d(x_nchw, weight_oihw, bias, *, stride, dilation):
    """Semantics of nn.Conv2d(..., stride, padding=0, dilation, groups=1, bias=True)."""
    n, c_in, h, w = x_nchw.shape
    c_out, c_in_w, kh, kw = weight_oihw.shape
    assert c_in == c_in_w
    h_out = (h - dilation * (kh - 1) - 1) // stride + 1
    w_out = (w - dilation * (kw - 1) - 1) // stride + 1
    k_dim = kh * kw * c_in
    p_dim = h_out * w_out

    # ---- wrapper-side im2col (layout prep only; FLOPs stay in the kernel) ----
    # Tap windows: x[:, :, i*d : i*d + Ho*s : s, j*d : j*d + Wo*s : s]
    windows = []
    for i in range(kh):
        for j in range(kw):
            h0 = i * dilation
            w0 = j * dilation
            if stride == 1:
                # contiguous slice (no strided-slice shuffles)
                win = jax.lax.slice(
                    x_nchw, (0, 0, h0, w0), (n, c_in, h0 + h_out, w0 + w_out))
            else:
                win = jax.lax.slice(
                    x_nchw, (0, 0, h0, w0),
                    (n, c_in, h0 + (h_out - 1) * stride + 1,
                     w0 + (w_out - 1) * stride + 1),
                    (1, 1, stride, stride))
            windows.append(win)                        # (N, Cin, Ho, Wo)
    # Stack taps along axis=1 -> K rows ordered (kh, kw, ci); straight reshape,
    # no 5-D transpose of the (comparatively large) patch tensor.
    patches = jnp.stack(windows, axis=1)               # (N, KH*KW, Cin, Ho, Wo)
    patches = patches.reshape(n, k_dim, p_dim)         # (N, K, P)
    patches = patches.astype(jnp.bfloat16)             # bf16 MXU operand

    # Reorder the tiny weight instead: OIHW -> (Cout, KH, KW, Cin) -> (Cout, K).
    w_mat = jnp.transpose(weight_oihw, (0, 2, 3, 1)).reshape(c_out, k_dim)
    w_mat = w_mat.astype(jnp.bfloat16)
    b_col = bias.reshape(c_out, 1).astype(jnp.float32)

    cost = pl.CostEstimate(
        flops=2 * n * c_out * k_dim * p_dim,
        transcendentals=0,
        bytes_accessed=(patches.size * 2 + w_mat.size * 2
                        + b_col.size * 4 + n * c_out * p_dim * 4),
    )

    out_flat = pl.pallas_call(
        _conv_gemm_kernel,
        out_shape=jax.ShapeDtypeStruct((n, c_out, p_dim), x_nchw.dtype),
        grid=(n,),  # one batch element per step; "parallel" -> both v7x TCs get work
        in_specs=[
            pl.BlockSpec((None, k_dim, p_dim), lambda b: (b, 0, 0)),
            pl.BlockSpec((c_out, k_dim), lambda b: (0, 0)),
            pl.BlockSpec((c_out, 1), lambda b: (0, 0)),
        ],
        out_specs=pl.BlockSpec((None, c_out, p_dim), lambda b: (b, 0, 0)),
        compiler_params=pltpu.CompilerParams(
            dimension_semantics=("parallel",)),
        cost_estimate=cost,
    )(patches, w_mat, b_col)

    # Output is already NCHW-ordered; only a trailing-dim reshape is needed.
    return out_flat.reshape(n, c_out, h_out, w_out)


if __name__ == "__main__":
    # Module hyper-parameters (small, consistent with NeuralNet.__init__)
    in_channels, out_channels = 4, 8
    kernel_size, stride, dilation = 3, 1, 2
    batch, H, W = 2, 16, 16

    key = jax.random.PRNGKey(0)
    kx, kw_, kb = jax.random.split(key, 3)

    x = jax.random.normal(kx, (batch, in_channels, H, W), dtype=jnp.float32)
    # Conv2d weight: OIHW, bias: (Cout,)
    weight = jax.random.normal(
        kw_, (out_channels, in_channels, kernel_size, kernel_size),
        dtype=jnp.float32) * 0.1
    bias = jax.random.normal(kb, (out_channels,), dtype=jnp.float32) * 0.1

    out = dilated_conv2d(x, weight, bias, stride=stride, dilation=dilation)
    out = jax.block_until_ready(out)

    # Reference check against XLA's dilated convolution (same semantics).
    # Tolerance relaxed because MXU operands are bf16 (f32 accumulation).
    ref = jax.lax.conv_general_dilated(
        jnp.transpose(x, (0, 2, 3, 1)),
        jnp.transpose(weight, (2, 3, 1, 0)),
        window_strides=(stride, stride),
        padding='VALID',
        rhs_dilation=(dilation, dilation),
        dimension_numbers=('NHWC', 'HWIO', 'NHWC'),
    ) + bias.reshape(1, 1, 1, -1)
    ref = jnp.transpose(ref, (0, 3, 1, 2))

    assert out.shape == ref.shape, (out.shape, ref.shape)
    assert jnp.allclose(out, ref, atol=2e-2, rtol=2e-2)
    print("KERNEL_OK")
</pallas_src>

<mosaic_0001>
module attributes {stable_mosaic.version = 11 : i64} {
  func.func @_conv_gemm_kernel(%arg0: i32, %arg1: memref<1x36x144xbf16, #tpu.memory_space<vmem>>, %arg2: memref<8x36xbf16, #tpu.memory_space<vmem>>, %arg3: memref<8x1xf32, #tpu.memory_space<vmem>>, %arg4: memref<1x8x144xf32, #tpu.memory_space<vmem>>) attributes {dimension_semantics = [#tpu.dimension_semantics<parallel>], iteration_bounds = array<i64: 2>, scalar_prefetch = 0 : i64, scratch_operands = 0 : i64, tpu.core_type = #tpu.core_type<tc>, window_params = [{transform_indices = @transform_0, window_bounds = array<i64: 1, 36, 144>}, {pipeline_mode = #tpu.pipeline_mode<synchronous>, transform_indices = @transform_1, window_bounds = array<i64: 8, 36>}, {pipeline_mode = #tpu.pipeline_mode<synchronous>, transform_indices = @transform_2, window_bounds = array<i64: 8, 1>}, {transform_indices = @transform_3, window_bounds = array<i64: 1, 8, 144>}]} {
    %c0 = arith.constant 0 : index
    %c0_0 = arith.constant 0 : index
    %0 = vector.load %arg2[%c0, %c0_0] : memref<8x36xbf16, #tpu.memory_space<vmem>>, vector<8x36xbf16>
    %c0_1 = arith.constant 0 : index
    %c0_2 = arith.constant 0 : index
    %c0_3 = arith.constant 0 : index
    %1 = vector.load %arg1[%c0_1, %c0_2, %c0_3] : memref<1x36x144xbf16, #tpu.memory_space<vmem>>, vector<1x36x144xbf16>
    %2 = vector.shape_cast %1 : vector<1x36x144xbf16> to vector<36x144xbf16>
    %cst = arith.constant dense<0.000000e+00> : vector<8x144xf32>
    %3 = tpu.matmul %0, %2, %cst {dimension_numbers = #tpu.dot_dimension_numbers<[1], [0], [0], [1], [0, 0, 1, 1], [], []>} : vector<8x36xbf16>, vector<36x144xbf16>, vector<8x144xf32> -> vector<8x144xf32>
    %c0_4 = arith.constant 0 : index
    %c0_5 = arith.constant 0 : index
    %4 = vector.load %arg3[%c0_4, %c0_5] : memref<8x1xf32, #tpu.memory_space<vmem>>, vector<8x1xf32>
    %5 = vector.broadcast %4 : vector<8x1xf32> to vector<8x144xf32>
    %6 = arith.addf %3, %5 : vector<8x144xf32>
    %c0_6 = arith.constant 0 : index
    %c0_7 = arith.constant 0 : index
    %c0_8 = arith.constant 0 : index
    %7 = vector.load %arg4[%c0_6, %c0_7, %c0_8] : memref<1x8x144xf32, #tpu.memory_space<vmem>>, vector<1x8x144xf32>
    %8 = vector.shape_cast %7 : vector<1x8x144xf32> to vector<8x144xf32>
    %9 = vector.shape_cast %6 : vector<8x144xf32> to vector<1x8x144xf32>
    tpu.vector_store %arg4[%c0_6, %c0_7, %c0_8], %9 {strides = array<i32>} : memref<1x8x144xf32, #tpu.memory_space<vmem>>, vector<1x8x144xf32>,
    return
  }
  func.func @transform_0(%arg0: i32) -> (i32, i32, i32) {
    %c0_i32 = arith.constant 0 : i32
    %c0_i32_0 = arith.constant 0 : i32
    %c0_i32_1 = arith.constant 0 : i32
    return %arg0, %c0_i32, %c0_i32_0 : i32, i32, i32
  }
  func.func @transform_1(%arg0: i32) -> (i32, i32) {
    %c0_i32 = arith.constant 0 : i32
    %c0_i32_0 = arith.constant 0 : i32
    %c0_i32_1 = arith.constant 0 : i32
    return %c0_i32, %c0_i32_0 : i32, i32
  }
  func.func @transform_2(%arg0: i32) -> (i32, i32) {
    %c0_i32 = arith.constant 0 : i32
    %c0_i32_0 = arith.constant 0 : i32
    %c0_i32_1 = arith.constant 0 : i32
    return %c0_i32, %c0_i32_0 : i32, i32
  }
  func.func @transform_3(%arg0: i32) -> (i32, i32, i32) {
    %c0_i32 = arith.constant 0 : i32
    %c0_i32_0 = arith.constant 0 : i32
    %c0_i32_1 = arith.constant 0 : i32
    return %arg0, %c0_i32, %c0_i32_0 : i32, i32, i32
  }
}

</mosaic_0001>

<bundles_post_ra>
// kernel: dilated_conv2d.1
= control target key start
LH: loop header
LB: loop body
LE: loop exit
PB: predicated region body
PF: predicated region fallthrough
CT: control target
= control target key end

     0   :  { %s386_s12 = smov 0   ;;  %s409_s0 = inlined_call_operand.vmem [shape: bf16[2,36,144], index: 0, kind: input, shape index: {}]   ;;  %s410_s1 = inlined_call_operand.vmem [shape: bf16[8,36], index: 1, kind: input, shape index: {}]   ;;  %s411_s2 = inlined_call_operand.vmem [shape: f32[8,1], index: 2, kind: input, shape index: {}]   ;;  %s412_s3 = inlined_call_operand.vmem [shape: f32[2,8,144], index: 3, kind: output, shape index: {}]  }
   0x1 LB: > { %s319_s13 = sadd.s32 4294967295, %s363_s12   ;;  %p323_p0 = scmp.ge.s32.totalorder %s363_s12, 1  ;;  %s363_s12 = sphi %s386_s12, %s13_s12  }
   0x2   : > { %p137_p1 = scmp.lt.s32.totalorder %s363_s12, 3 }
   0x4   : > { %p138_p2 = pnand %p323_p0, %p137_p1 }
   0x5   : > { %p161_p3 = scmp.lt.s32.totalorder (!%p138_p2), %s319_s13, 1  ;;  %v365_v0 = vmov (!%p138_p2), 0   ;;  %v178_v1 = vld [vmem:[%s411_s2] sm:$0xff] (!%p138_p2)  ;;  %vm213_vm0 = vcmask (!%p138_p2), 1041408   ;;  %vm209_vm1 = vcmask (!%p138_p2), 293888   ;;  %vm262_vm2 = vcmask (!%p138_p2), 130048  }
   0x6   : > { %141 = sbr.rel (%p138_p2) target bundleno = 246 (0xf6), region = 32  ;;  %252 = vmatprep.mubr.bf16.mxu0 (!%p138_p2), %v365_v0  ;;  %348 = vset.pattern.permute.xlu0 (!%p138_p2), %v365_v0  ;;  %v172_v10 = vld [vmem:[%s410_s1] sm:$0xf] (!%p138_p2) }
   0x7   : > { %181 = vperm.xlu0 (!%p138_p2), %348, %v178_v1  }
   0xd   : > { %s414_s13 = smov (!%p161_p3, %s319_s13), 1 }
   0xe   : > { %s338_s16 = smul.u32 40, %s414_s13  ;;  %s337_s22 = sshll.u32 %s414_s13, 4 }
   0xf   : > { %s170_s25 = scalar_lea.vmem %s412_s3, %s337_s22 }
  0x10   : > { %s165_s19 = scalar_lea.vmem %s409_s0, %s338_s16 }
  0x11   : > { %v349_v2 = vld [vmem:[%s165_s19 + $0x4] ss:$8 sps:$4 sm:$0xff]   ;;  %v351_v3 = vld [vmem:[%s165_s19] ss:$8 sps:$4 sm:$0xff]   ;;  %v352_v4 = vld [vmem:[%s165_s19 + $0x14] ss:$8 sps:$4 sm:$0xff]  }
  0x12   : > { %220 = vmatprep.subr.bf16.mxu0 %v349_v2  ;;  %v177_v5 = vld [vmem:[%s165_s19 + $0x20] sm:$0x33]  ;;  %v354_v6 = vld [vmem:[%s165_s19 + $0x10] ss:$8 sps:$4 sm:$0xff]  }
  0x13   : > { %221 = vmatpush1.bf16.msra.mxu0 %v351_v3  ;;  %v332_v7 = vcombine.high %v177_v5, %v177_v5  ;;  %v331_v8 = vcombine.low %v177_v5, %v177_v5 }
  0x14   : > { %222 = vmatprep.subr.bf16.mxu0 %v352_v4 }
  0x15   : > { %v215_v9 = vsel %vm213_vm0, %v331_v8, 0 }
  0x17   : > { %223 = vmatpush1.bf16.msra.mxu0 %v354_v6 }
  0x18   : > { %333 = vmatprep.subr.msk.bf16.mxu0 %vm213_vm0, %v332_v7 }
  0x1b   : > { %225 = vmatpush1.bf16.msra.mxu0 %v215_v9 }
  0x1e   : > { %334 = vmatmul.mubr.msk.bf16.vlgmr.msra.gmra.mrb[0].mxu0 %vm209_vm1, %v172_v10 }
  0x86   : > { %v182_v11 = vpop.permute.xlu0 %181 }
  0xf1   : > { %v254_v12 = vpop.f32.mrb[0].mxu0 }
  0xf2   : > { %v255_v13 = vadd.f32 %v254_v12, %v182_v11  ;;  %v256_v14 = vpop.f32.mrb[1].mxu0 }
  0xf3   : > { %v257_v15 = vadd.f32 %v256_v14, %v182_v11  ;;  %v258_v16 = vpop.f32.mrb[2].mxu0 }
  0xf4   : > { %261 = vst [vmem:[%s170_s25] sm:$0xff] %v255_v13  ;;  %v259_v17 = vpop.f32.mrb[3].mxu0 }
  0xf5   : > { %263 = vst.msk [vmem:[%s170_s25 + $0x8] sm:$0xff] %vm262_vm2, %v257_v15 }
  0xf6 PF: > { %s13_s12 = sadd.s32 1, %s363_s12  }
  0xf7   : > { %p10_p4 = scmp.ge.s32.totalorder %s13_s12, 4  }
  0xf9   :  { %12 = sbr.rel (!%p10_p4) target bundleno = 1 (0x1), region = 62 }

</bundles_post_ra>
